<compile_context>
chip_gen: v5e
topology: v5e:2x2
jax: 0.10.0
libtpu: 0.0.40
codegen_flags: <defaults>
</compile_context>

<pallas_src>
import math

import jax
import jax.numpy as jnp
from jax import lax
from jax.experimental import pallas as pl
from jax.experimental.pallas import tpu as pltpu


def _round_up(n, m):
    return ((n + m - 1) // m) * m


# ---------------------------------------------------------------------------
# Pallas kernel: fused MLP (Linear -> ReLU -> ... -> Linear), transposed layout
# ---------------------------------------------------------------------------
def _make_mlp_kernel(meta, n_mid, act_dtype):
    """meta: {name: (row_off, rows, cols)} into the packed param buffer.
    All weights are stored transposed ((fan_out, fan_in)) and biases as
    (fan_out, 1) columns; row offsets are multiples of 8 (sublane-aligned) so
    static ref slices are cheap.  Activations flow as (feature, batch), i.e.
    batch on the lane axis (lane-dense)."""

    def kernel(x_ref, t_ref, p_ref, o_ref):
        def param(name):
            r0, r, c = meta[name]
            return p_ref[r0:r0 + r, 0:c]

        x = x_ref[...]                           # (tb, in_dim)  natural layout
        t = t_ref[...].astype(act_dtype)         # (1, tb)       lane-dense

        # First Linear with the [x, t] concat folded into a split matmul,
        # computed transposed:  h^T = W0x^T @ x^T + w0t * t + b0
        w0x = param("w0x")                       # (hid, in_dim)
        xm = x if x.dtype == w0x.dtype else x.astype(w0x.dtype)
        h = lax.dot_general(w0x, xm, (((1,), (1,)), ((), ())),
                            preferred_element_type=jnp.float32)
        h = h.astype(act_dtype)
        h = h + param("w0t").astype(act_dtype) * t + param("b0").astype(act_dtype)
        # TODO(synk): get_activation(act, ...) is assumed to be ReLU.
        h = jnp.maximum(h, 0.0)

        # Hidden Linears (transposed): h^T = W_i^T @ h^T + b_i
        for li in range(n_mid):
            w = param(f"w{li}")                  # (hid, hid)
            hm = h if h.dtype == w.dtype else h.astype(w.dtype)
            h = lax.dot_general(w, hm, (((1,), (0,)), ((), ())),
                                preferred_element_type=jnp.float32)
            h = h.astype(act_dtype) + param(f"bm{li}").astype(act_dtype)
            h = jnp.maximum(h, 0.0)

        # Last Linear, produced directly in (out_dim, tb) layout so the store
        # is lane-dense (batch on the 128-lane axis).
        wl = param("wl")                         # (out_dim, hid)
        hm = h if h.dtype == wl.dtype else h.astype(wl.dtype)
        out = lax.dot_general(wl, hm, (((1,), (0,)), ((), ())),
                              preferred_element_type=jnp.float32)
        out = out + param("bl").astype(jnp.float32)    # (out_dim, 1) broadcast
        o_ref[...] = out.astype(o_ref.dtype)

    return kernel


def mlp_forward(x, t, kparams, *, tb_max=8192,
                vmem_limit_bytes=48 * 1024 * 1024, transposed_output=False):
    """Fused MLP forward. x: (B, in_dim), t: (B, 1).
    Returns (B, out_dim), or the kernel's native lane-dense (out_dim, B) when
    transposed_output=True (skips the wrapper-side XLA transpose)."""
    B, in_dim = x.shape
    assert in_dim == kparams["in_dim_x"]
    packed = kparams["packed"]
    out_dim = kparams["out_dim"]
    hid = kparams["hid"]
    n_mid = kparams["n_mid"]
    act_dtype = jnp.float32 if packed.dtype == jnp.float32 else packed.dtype

    # t as a lane-dense (1, B) row; (B,1)->(1,B) is order-preserving.
    t_row = t.reshape(1, B)

    # Batch tile: as large as possible (amortizes the ~0.35us/step fixed grid
    # overhead), but capped so the grid has >= 2 steps whenever B allows it,
    # keeping both of v7x's TensorCores busy via the "parallel" grid axis.
    tb_max = max(128, _round_up(int(tb_max), 128))
    if B <= 128:
        tb = B                       # one full block; any B is a legal block dim
    else:
        tb = min(tb_max, _round_up(pl.cdiv(B, 2), 128))
        if tb >= B:
            tb = B
    grid = (pl.cdiv(B, tb),)

    in_specs = [
        pl.BlockSpec((tb, in_dim), lambda i: (i, 0)),     # x, natural layout
        pl.BlockSpec((1, tb), lambda i: (0, i)),          # t, lane-dense row
        pl.BlockSpec(packed.shape, lambda i: (0, 0)),     # all params, one DMA
    ]
    # Output is (out_dim, B): batch on the lane axis -> dense vector stores.
    out_spec = pl.BlockSpec((out_dim, tb), lambda i: (0, i))

    # Advisory cost estimate for XLA's scheduler.
    flops = 2 * B * ((in_dim + 1) * hid + n_mid * hid * hid + hid * out_dim)
    itemsize = jnp.dtype(x.dtype).itemsize
    bytes_accessed = ((B * in_dim + B + B * out_dim) * itemsize
                      + int(packed.size) * jnp.dtype(packed.dtype).itemsize)
    cost = pl.CostEstimate(flops=int(flops), transcendentals=0,
                           bytes_accessed=int(bytes_accessed))

    kernel = _make_mlp_kernel(kparams["meta"], n_mid, act_dtype)
    out_t = pl.pallas_call(
        kernel,
        out_shape=jax.ShapeDtypeStruct((out_dim, B), x.dtype),
        grid_spec=pltpu.PrefetchScalarGridSpec(
            num_scalar_prefetch=0,
            grid=grid,
            in_specs=in_specs,
            out_specs=out_spec,
        ),
        compiler_params=pltpu.CompilerParams(
            dimension_semantics=("parallel",),
            vmem_limit_bytes=vmem_limit_bytes,
        ),
        cost_estimate=cost,
    )(x, t_row, packed)

    if transposed_output:
        return out_t                 # (out_dim, B): no extra HBM round trip
    return out_t.T                   # module semantics: (B, out_dim)


# ---------------------------------------------------------------------------
# Parameter construction (deterministic, matches torch.nn.Linear semantics)
# ---------------------------------------------------------------------------
def init_mlp_params(key, num_layers, in_dim, hid_dim, out_dim, dtype=jnp.float32):
    """Canonical list of (W:(fan_in,fan_out), b:(1,fan_out)); x @ W + b == torch."""
    dims = [in_dim] + [hid_dim] * num_layers + [out_dim]
    params = []
    for li in range(len(dims) - 1):
        key, k_w, k_b = jax.random.split(key, 3)
        fan_in, fan_out = dims[li], dims[li + 1]
        bound = 1.0 / math.sqrt(fan_in)
        w = jax.random.uniform(k_w, (fan_in, fan_out), dtype, -bound, bound)
        b = jax.random.uniform(k_b, (1, fan_out), dtype, -bound, bound)
        params.append((w, b))
    return params


def pack_kernel_params(canon, feat_in, param_dtype=jnp.float32):
    """Pack every weight/bias into ONE grid-invariant 2-D buffer.

    Each segment is stored transposed ((fan_out, fan_in) weights, (fan_out, 1)
    bias columns), row-stacked with sublane-aligned (multiple-of-8) row offsets
    so the kernel slices it with zero-cost static ref slices.  One buffer ==
    one prologue DMA instead of 2 + 2*num_layers + 2 separate ones.

    param_dtype: keep f32 on v5e (no bf16 VPU/EUP); bf16 is a good choice on
    v6e/v7x (MXU-native, halves weight/activation vreg traffic)."""
    assert len(canon) >= 2
    hid = canon[0][0].shape[1]
    out_dim = canon[-1][0].shape[1]

    segs = []
    w0, b0 = canon[0]                                # (feat_in + 1, hid), (1, hid)
    segs.append(("w0x", w0[:feat_in, :].T))          # (hid, feat_in)
    segs.append(("w0t", w0[feat_in:, :].T))          # (hid, 1) time-feature col
    segs.append(("b0", b0.T))                        # (hid, 1)
    for li, (w, b) in enumerate(canon[1:-1]):
        segs.append((f"w{li}", w.T))                 # (hid, hid)
        segs.append((f"bm{li}", b.T))                # (hid, 1)
    wl, bl = canon[-1]
    segs.append(("wl", wl.T))                        # (out_dim, hid)
    segs.append(("bl", bl.T))                        # (out_dim, 1)

    width = max(a.shape[1] for _, a in segs)
    meta, blocks, row = {}, [], 0
    for name, a in segs:
        r, c = a.shape
        pr = _round_up(r, 8)                         # sublane-aligned offsets
        meta[name] = (row, r, c)
        blk = jnp.zeros((pr, width), param_dtype).at[:r, :c].set(
            a.astype(param_dtype))
        blocks.append(blk)
        row += pr
    packed = jnp.concatenate(blocks, axis=0)
    return {"packed": packed, "meta": meta, "n_mid": len(canon) - 2,
            "in_dim_x": feat_in, "hid": hid, "out_dim": out_dim}


# ---------------------------------------------------------------------------
# Network wrapper (Torus manifold, MLP backbone)
# ---------------------------------------------------------------------------
class NetworkTorusMLP:
    def __init__(self, num_layers, in_dim, hid_dim, out_dim, key,
                 param_dtype=jnp.float32):
        # Torus: self.in_dim = in_dim, self.out_dim = out_dim; the MLP input
        # dim is in_dim + 1 for the time feature.
        self.in_dim = in_dim
        self.out_dim = out_dim
        self.canon_params = init_mlp_params(key, num_layers, in_dim + 1,
                                            hid_dim, out_dim)
        self.kernel_params = pack_kernel_params(self.canon_params, in_dim,
                                                param_dtype)

    def __call__(self, x, t, transposed_output=False):
        # shape() is identity for 2-D Torus input; the [x, t] concat is folded
        # into the first matmul inside the kernel (no HBM round-trip).
        return mlp_forward(x, t, self.kernel_params,
                           transposed_output=transposed_output)
        # TODO(synk): SO(n)/U(n) branches need manifold.proju (skew/tangent
        # projection) which is outside the provided module; Torus path only.


# Pure-JAX reference for correctness checking
def reference_forward(x, t, canon_params):
    h = jnp.concatenate([x, t], axis=-1)
    n = len(canon_params)
    for i, (w, b) in enumerate(canon_params):
        h = jnp.dot(h, w, precision=jax.lax.Precision.HIGHEST) + b
        if i < n - 1:
            h = jnp.maximum(h, 0.0)
    return h


if __name__ == "__main__":
    key = jax.random.PRNGKey(0)
    k_net, k_x, k_t, k_x2, k_t2 = jax.random.split(key, 5)

    # small shapes: batch=8, feature dim=4, hidden=32, output dim=4, 2 hidden layers
    batch, in_dim, hid_dim, out_dim, num_layers = 8, 4, 32, 4, 2
    net = NetworkTorusMLP(num_layers, in_dim, hid_dim, out_dim, k_net)

    # Case 1: tiny batch (single full-batch block).
    x = jax.random.normal(k_x, (batch, in_dim), jnp.float32)
    t = jax.random.uniform(k_t, (batch, 1), jnp.float32)
    out = jax.block_until_ready(net(x, t))
    ref = reference_forward(x, t, net.canon_params)
    assert out.shape == (batch, out_dim)
    assert jnp.allclose(out, ref, atol=1e-4, rtol=1e-4)

    # Case 2: larger ragged batch exercising the tiled path (grid of 2 parallel
    # steps; last block masked since B is not a multiple of tb).
    big_b = 600
    x2 = jax.random.normal(k_x2, (big_b, in_dim), jnp.float32)
    t2 = jax.random.uniform(k_t2, (big_b, 1), jnp.float32)
    out2 = jax.block_until_ready(net(x2, t2))
    ref2 = reference_forward(x2, t2, net.canon_params)
    assert out2.shape == (big_b, out_dim)
    assert jnp.allclose(out2, ref2, atol=1e-4, rtol=1e-4)

    # Case 3: native transposed output (no wrapper-side transpose).
    out3 = jax.block_until_ready(net(x2, t2, transposed_output=True))
    assert out3.shape == (out_dim, big_b)
    assert jnp.allclose(out3.T, ref2, atol=1e-4, rtol=1e-4)

    print("KERNEL_OK")
</pallas_src>

<mosaic_0001>
module attributes {stable_mosaic.version = 11 : i64} {
  func.func @kernel(%arg0: i32, %arg1: memref<8x4xf32, #tpu.memory_space<vmem>>, %arg2: memref<1x8xf32, #tpu.memory_space<vmem>>, %arg3: memref<176x32xf32, #tpu.memory_space<vmem>>, %arg4: memref<4x8xf32, #tpu.memory_space<vmem>>) attributes {dimension_semantics = [#tpu.dimension_semantics<parallel>], iteration_bounds = array<i64: 1>, scalar_prefetch = 0 : i64, scratch_operands = 0 : i64, tpu.core_type = #tpu.core_type<tc>, window_params = [{transform_indices = @transform_0, window_bounds = array<i64: 8, 4>}, {transform_indices = @transform_1, window_bounds = array<i64: 1, 8>}, {pipeline_mode = #tpu.pipeline_mode<synchronous>, transform_indices = @transform_2, window_bounds = array<i64: 176, 32>}, {transform_indices = @transform_3, window_bounds = array<i64: 4, 8>}]} {
    %c0 = arith.constant 0 : index
    %c0_0 = arith.constant 0 : index
    %0 = vector.load %arg1[%c0, %c0_0] : memref<8x4xf32, #tpu.memory_space<vmem>>, vector<8x4xf32>
    %c0_1 = arith.constant 0 : index
    %c0_2 = arith.constant 0 : index
    %1 = vector.load %arg2[%c0_1, %c0_2] : memref<1x8xf32, #tpu.memory_space<vmem>>, vector<1x8xf32>
    %c0_3 = arith.constant 0 : index
    %c0_4 = arith.constant 0 : index
    %2 = vector.load %arg3[%c0_3, %c0_4] : memref<176x32xf32, #tpu.memory_space<vmem>>, vector<32x4xf32>
    %cst = arith.constant dense<0.000000e+00> : vector<32x8xf32>
    %3 = tpu.matmul %2, %0, %cst {dimension_numbers = #tpu.dot_dimension_numbers<[1], [1], [0], [0], [0, 0, 1, 0], [], []>} : vector<32x4xf32>, vector<8x4xf32>, vector<32x8xf32> -> vector<32x8xf32>
    %c32 = arith.constant 32 : index
    %c0_5 = arith.constant 0 : index
    %4 = vector.load %arg3[%c32, %c0_5] : memref<176x32xf32, #tpu.memory_space<vmem>>, vector<32x1xf32>
    %5 = vector.broadcast %4 : vector<32x1xf32> to vector<32x8xf32>
    %6 = vector.broadcast %1 : vector<1x8xf32> to vector<32x8xf32>
    %7 = arith.mulf %5, %6 : vector<32x8xf32>
    %8 = arith.addf %3, %7 : vector<32x8xf32>
    %c64 = arith.constant 64 : index
    %c0_6 = arith.constant 0 : index
    %9 = vector.load %arg3[%c64, %c0_6] : memref<176x32xf32, #tpu.memory_space<vmem>>, vector<32x1xf32>
    %10 = vector.broadcast %9 : vector<32x1xf32> to vector<32x8xf32>
    %11 = arith.addf %8, %10 : vector<32x8xf32>
    %cst_7 = arith.constant 0.000000e+00 : f32
    %12 = vector.broadcast %cst_7 : f32 to vector<32x8xf32>
    %13 = arith.maximumf %11, %12 : vector<32x8xf32>
    %c96 = arith.constant 96 : index
    %c0_8 = arith.constant 0 : index
    %14 = vector.load %arg3[%c96, %c0_8] : memref<176x32xf32, #tpu.memory_space<vmem>>, vector<32x32xf32>
    %cst_9 = arith.constant dense<0.000000e+00> : vector<32x8xf32>
    %15 = tpu.matmul %14, %13, %cst_9 {dimension_numbers = #tpu.dot_dimension_numbers<[1], [0], [0], [1], [0, 0, 1, 1], [], []>} : vector<32x32xf32>, vector<32x8xf32>, vector<32x8xf32> -> vector<32x8xf32>
    %c128 = arith.constant 128 : index
    %c0_10 = arith.constant 0 : index
    %16 = vector.load %arg3[%c128, %c0_10] : memref<176x32xf32, #tpu.memory_space<vmem>>, vector<32x1xf32>
    %17 = vector.broadcast %16 : vector<32x1xf32> to vector<32x8xf32>
    %18 = arith.addf %15, %17 : vector<32x8xf32>
    %cst_11 = arith.constant 0.000000e+00 : f32
    %19 = vector.broadcast %cst_11 : f32 to vector<32x8xf32>
    %20 = arith.maximumf %18, %19 : vector<32x8xf32>
    %c160 = arith.constant 160 : index
    %c0_12 = arith.constant 0 : index
    %21 = vector.load %arg3[%c160, %c0_12] : memref<176x32xf32, #tpu.memory_space<vmem>>, vector<4x32xf32>
    %cst_13 = arith.constant dense<0.000000e+00> : vector<4x8xf32>
    %22 = tpu.matmul %21, %20, %cst_13 {dimension_numbers = #tpu.dot_dimension_numbers<[1], [0], [0], [1], [0, 0, 1, 1], [], []>} : vector<4x32xf32>, vector<32x8xf32>, vector<4x8xf32> -> vector<4x8xf32>
    %c168 = arith.constant 168 : index
    %c0_14 = arith.constant 0 : index
    %23 = vector.load %arg3[%c168, %c0_14] : memref<176x32xf32, #tpu.memory_space<vmem>>, vector<4x1xf32>
    %24 = vector.broadcast %23 : vector<4x1xf32> to vector<4x8xf32>
    %25 = arith.addf %22, %24 : vector<4x8xf32>
    %c0_15 = arith.constant 0 : index
    %c0_16 = arith.constant 0 : index
    %26 = vector.load %arg4[%c0_15, %c0_16] : memref<4x8xf32, #tpu.memory_space<vmem>>, vector<4x8xf32>
    tpu.vector_store %arg4[%c0_15, %c0_16], %25 {strides = array<i32>} : memref<4x8xf32, #tpu.memory_space<vmem>>, vector<4x8xf32>,
    return
  }
  func.func @transform_0(%arg0: i32) -> (i32, i32) {
    %c0_i32 = arith.constant 0 : i32
    %c0_i32_0 = arith.constant 0 : i32
    return %arg0, %c0_i32 : i32, i32
  }
  func.func @transform_1(%arg0: i32) -> (i32, i32) {
    %c0_i32 = arith.constant 0 : i32
    %c0_i32_0 = arith.constant 0 : i32
    return %c0_i32, %arg0 : i32, i32
  }
  func.func @transform_2(%arg0: i32) -> (i32, i32) {
    %c0_i32 = arith.constant 0 : i32
    %c0_i32_0 = arith.constant 0 : i32
    %c0_i32_1 = arith.constant 0 : i32
    return %c0_i32, %c0_i32_0 : i32, i32
  }
  func.func @transform_3(%arg0: i32) -> (i32, i32) {
    %c0_i32 = arith.constant 0 : i32
    %c0_i32_0 = arith.constant 0 : i32
    return %c0_i32, %arg0 : i32, i32
  }
}

</mosaic_0001>

<bundles_post_ra>
// kernel: tpu_custom_call.1
= control target key start
LH: loop header
LB: loop body
LE: loop exit
PB: predicated region body
PF: predicated region fallthrough
CT: control target
= control target key end

     0   :  { %vm52_vm0 = vcmask 31744   ;;  %v302_v3 = vmov 0   ;;  %s410_s0 = inlined_call_operand.vmem [shape: f32[8,4], index: 0, kind: input, shape index: {}]   ;;  %s411_s1 = inlined_call_operand.vmem [shape: f32[1,8], index: 1, kind: input, shape index: {}]   ;;  %s412_s2 = inlined_call_operand.vmem [shape: f32[176,32], index: 2, kind: input, shape index: {}]   ;;  %s413_s3 = inlined_call_operand.hbm [shape: f32[4,8], index: 3, kind: output, shape index: {}]  }
   0x1   :  { %v15_v0 = vld [vmem:[%s410_s0] sm:$0xff]  ;;  %v24_v1 = vld [vmem:[%s412_s2 + $0x38] sm:$0xff]  ;;  %v22_v2 = vld [vmem:[%s412_s2 + $0x28] sm:$0xff]  ;;  %273 = vset.pattern.permute.xlu1 %v302_v3  ;;  %272 = vset.pattern.permute.xlu0 %v302_v3 }
   0x2   :  { %251 = vmatpush.xpose.msk.msra.mxu0 %vm52_vm0, %v15_v0  ;;  %42 = vperm.xlu0 %272, %v24_v1   ;;  %v17_v4 = vld [vmem:[%s412_s2] sm:$0xff]  ;;  %v20_v5 = vld [vmem:[%s412_s2 + $0x18] sm:$0xff] }
   0x3   :  { %32 = vperm.xlu1 %273, %v22_v2   ;;  %261 = vmatpush.xpose.msk.msra.mxu1 %vm52_vm0, %v15_v0  ;;  %v21_v6 = vld [vmem:[%s412_s2 + $0x20] sm:$0xff] }
   0x4   :  { %274 = vset.pattern.permute.xlu2 %v302_v3 }
   0x5   :  { %252 = vmatmul.msk.f32.vlgmr.msra.gmra.mxu0 %vm52_vm0, %v17_v4  ;;  %27 = vperm.xlu2 %274, %v21_v6  }
   0x6   :  { %255 = vmatmul.msk.f32.vlgmr.msra.gmra.mxu1 %vm52_vm0, %v20_v5 }
   0x7   :  { %8 = vsyncpa [#allocation3], 0  ;;  %v23_v7 = vld [vmem:[%s412_s2 + $0x30] sm:$0xff]  ;;  %v100_v8 = vld [vmem:[%s412_s2 + $0x58] sm:$0xff]  ;;  %vm157_vm1 = vcmask 261120   ;;  %s303_s30 = smov [#allocation2]  }
   0x8   :  { %v18_v9 = vld [vmem:[%s412_s2 + $0x8] sm:$0xff]  ;;  %v99_v10 = vld [vmem:[%s412_s2 + $0x50] sm:$0xff]  ;;  %v97_v12 = vld [vmem:[%s412_s2 + $0x40] sm:$0xff]  ;;  %s240_s4 = sshll.u32 %s303_s30, 4  ;;  %s242_s7 = sshll.u32 %s413_s3, 4  ;;  %vm233_vm2 = vcmask 60416   ;;  %s241_s4 = int_to_ptr.vmem [resolvable:$true] %s240_s4  ;;  %s243_s7 = int_to_ptr.hbm [resolvable:$true] %s242_s7 }
   0x9   :  { %v98_v11 = vld [vmem:[%s412_s2 + $0x48] sm:$0xff]  ;;  %v19_v13 = vld [vmem:[%s412_s2 + $0x10] sm:$0xff]  ;;  %v136_v14 = vld [vmem:[%s412_s2 + $0x98] sm:$0xff] }
   0xa   :  { %37 = vperm.xlu0 %272, %v23_v7   ;;  %v135_v15 = vld [vmem:[%s412_s2 + $0x90] sm:$0xff]  ;;  %v134_v16 = vld [vmem:[%s412_s2 + $0x88] sm:$0xff]  ;;  %v133_v17 = vld [vmem:[%s412_s2 + $0x80] sm:$0xff] }
   0xb   :  { %118 = vperm.xlu1 %273, %v100_v8   ;;  %v204_v18 = vld [vmem:[%s412_s2 + $0xa8] sm:$0xf]  ;;  %v275_v20 = vld [vmem:[%s411_s1] ss:$0 sm:$0xff]  ;;  %v131_v50 = vld [vmem:[%s412_s2 + $0x70] sm:$0xff] }
   0xc   :  { %v129_v48 = vld [vmem:[%s412_s2 + $0x60] sm:$0xff]  ;;  %v130_v49 = vld [vmem:[%s412_s2 + $0x68] sm:$0xff]  ;;  %v132_v51 = vld [vmem:[%s412_s2 + $0x78] sm:$0xff] }
   0xd   :  { %253 = vmatmul.msk.f32.gmra.mxu0 %vm52_vm0, %v18_v9  ;;  %113 = vperm.xlu2 %274, %v99_v10   ;;  %v203_v4 = vld [vmem:[%s412_s2 + $0xa0] sm:$0xf] }
  0x12   :  { %108 = vperm.xlu0 %272, %v98_v11  }
  0x13   :  { %103 = vperm.xlu1 %273, %v97_v12  }
  0x15   :  { %254 = vmatmul.msk.f32.gmra.mxu0 %vm52_vm0, %v19_v13  ;;  %154 = vperm.xlu2 %274, %v136_v14  }
  0x1a   :  { %149 = vperm.xlu0 %272, %v135_v15  }
  0x1b   :  { %144 = vperm.xlu1 %273, %v134_v16  }
  0x1d   :  { %139 = vperm.xlu2 %274, %v133_v17  }
  0x22   :  { %207 = vperm.xlu0 %272, %v204_v18  }
  0x5f   :  { %v28_v29 = vpop.permute.xlu2 %27 }
  0x60   :  { %v48_v33 = vmul.f32 %v275_v20, %v28_v29 }
  0x67   :  { %v114_v37 = vpop.permute.xlu2 %113 }
  0x6f   :  { %v155_v53 = vpop.permute.xlu2 %154 }
  0x74   :  { %v43_v21 = vpop.permute.xlu0 %42 }
  0x75   :  { %v33_v19 = vpop.permute.xlu1 %32  ;;  %v51_v22 = vmul.f32 %v275_v20, %v43_v21 }
  0x76   :  { %v49_v32 = vmul.f32 %v275_v20, %v33_v19 }
  0x77   :  { %v140_v63 = vpop.permute.xlu2 %139 }
  0x7c   :  { %v38_v30 = vpop.permute.xlu0 %37 }
  0x7d   :  { %v119_v26 = vpop.permute.xlu1 %118  ;;  %v50_v34 = vmul.f32 %v275_v20, %v38_v30 }
  0x82   :  { %v85_v23 = vpop.f32.mrf.mxu0 }
  0x83   :  { %v94_v24 = vpop.f32.mrf.mxu1  ;;  %v86_v38 = vadd.f32 %v85_v23, %v48_v33 }
  0x84   :  { %v95_v25 = vadd.f32 %v94_v24, %v51_v22  ;;  %v109_v40 = vpop.permute.xlu0 %108 }
  0x85   :  { %v104_v41 = vpop.permute.xlu1 %103 }
  0x86   :  { %v124_v27 = vadd.f32 %v119_v26, %v95_v25  ;;  %v121_v44 = vadd.f32 %v104_v41, %v86_v38 }
  0x88   :  { %v128_v28 = vmax.f32 %v124_v27, 0.0  ;;  %v125_v47 = vmax.f32 %v121_v44, 0.0 }
  0x8a   :  { %v88_v31 = vpop.f32.mrf.mxu0  ;;  %182 = vmatpush.msrb.mxu1 %v128_v28  ;;  %262 = vmatpush.msra.mxu2 %v128_v28 }
  0x8b   :  { %263 = vmatpush.msra.mxu3 %v128_v28  ;;  %v89_v35 = vadd.f32 %v88_v31, %v49_v32 }
  0x8c   :  { %v150_v54 = vpop.permute.xlu0 %149 }
  0x8d   :  { %v122_v42 = vadd.f32 %v109_v40, %v89_v35  ;;  %v145_v59 = vpop.permute.xlu1 %144 }
  0x8f   :  { %v126_v46 = vmax.f32 %v122_v42, 0.0 }
  0x92   :  { %v91_v36 = vpop.f32.mrf.mxu0 }
  0x93   :  { %v92_v39 = vadd.f32 %v91_v36, %v50_v34 }
  0x94   :  { %v208_v5 = vpop.permute.xlu0 %207 }
  0x95   :  { %v123_v43 = vadd.f32 %v114_v37, %v92_v39 }
  0x97   :  { %v127_v45 = vmax.f32 %v123_v43, 0.0 }
  0x99   :  { %183 = vmatpush.msrb.mxu1 %v127_v45  ;;  %264 = vmatpush.msra.mxu2 %v127_v45 }
  0x9a   :  { %265 = vmatpush.msra.mxu3 %v127_v45 }
  0x9b   :  { %184 = vmatpush.msrb.mxu1 %v126_v46  ;;  %266 = vmatpush.msra.mxu2 %v126_v46 }
  0x9c   :  { %267 = vmatpush.msra.mxu3 %v126_v46 }
  0x9d   :  { %185 = vmatpush.msrb.mxu1 %v125_v47  ;;  %268 = vmatpush.msra.mxu2 %v125_v47 }
  0x9e   :  { %269 = vmatpush.msra.mxu3 %v125_v47  ;;  %256 = vmatmul.msk.f32.vlgmr.msrb.gmra.mxu1 %vm157_vm1, %v129_v48 }
  0x9f   :  { %257 = vmatmul.msk.f32.vlgmr.msra.gmra.mxu2 %vm157_vm1, %v130_v49  ;;  %258 = vmatmul.msk.f32.vlgmr.msra.gmra.mxu3 %vm157_vm1, %v131_v50 }
  0xa7   :  { %259 = vmatmul.msk.f32.gmra.mxu3 %vm157_vm1, %v132_v51 }
 0x11b   :  { %v187_v60 = vpop.f32.mrf.mxu1 }
 0x11c   :  { %v188_v0 = vadd.f32 %v187_v60, %v140_v63 }
 0x11e   :  { %v199_v3 = vmax.f32 %v188_v0, 0.0 }
 0x122   :  { %v193_v52 = vpop.f32.mrf.mxu3  ;;  %v190_v55 = vpop.f32.mrf.mxu2 }
 0x123   :  { %v194_v57 = vadd.f32 %v193_v52, %v150_v54  ;;  %v191_v61 = vadd.f32 %v190_v55, %v145_v59 }
 0x125   :  { %v201_v1 = vmax.f32 %v194_v57, 0.0  ;;  %v200_v2 = vmax.f32 %v191_v61, 0.0 }
 0x12a   :  { %v196_v56 = vpop.f32.mrf.mxu3 }
 0x12b   :  { %v197_v58 = vadd.f32 %v196_v56, %v155_v53 }
 0x12d   :  { %v202_v62 = vmax.f32 %v197_v58, 0.0 }
 0x12f   :  { %225 = vmatpush.msrb.mxu2 %v202_v62 }
 0x131   :  { %226 = vmatpush.msrb.mxu2 %v201_v1 }
 0x133   :  { %227 = vmatpush.msrb.mxu2 %v200_v2 }
 0x135   :  { %228 = vmatpush.msrb.mxu2 %v199_v3 }
 0x136   :  { %260 = vmatmul.msk.f32.vlgmr.msrb.gmra.mxu2 %vm157_vm1, %v203_v4 }
 0x1b9   :  { %v230_v6 = vpop.f32.mrf.mxu2 }
 0x1ba   :  { %v231_v7 = vadd.f32 %v230_v6, %v208_v5 }
 0x1bc   :  { %234 = vst.msk [vmem:[#allocation2] sm:$0xf] %vm233_vm2, %v231_v7 }
 0x1bd   :  { %245 = dma.vmem_to_hbm [thread:$0]  %s241_s4, 64, %s243_s7, [#allocation3]  }
 0x1be   :  { %300 = dma.done.wait [#allocation3], 64  }
 0x1bf   :  { %301 = vsyncadd [#allocation3], 4294967232 }
 0x1c0   :  { %250 = vsyncpa [#allocation3], 1 }

</bundles_post_ra>
